<compile_context>
chip_gen: v5e
topology: v5e:2x2
jax: 0.10.0
libtpu: 0.0.40
codegen_flags: <defaults>
</compile_context>

<pallas_src>
import functools

import jax
import jax.numpy as jnp
from jax.experimental import pallas as pl
from jax.experimental.pallas import tpu as pltpu

_LANE = 128      # lane width: output dim padded to a multiple of this
_SUBLANE = 8     # sublane width: row tile must be a multiple of this


def _round_up(x, m):
    return ((x + m - 1) // m) * m


def _align_tile(tm):
    """Align the row tile to MXU M-granularity when large, else to the sublane."""
    if tm >= 256:
        return (tm // 256) * 256
    if tm >= 128:
        return 128
    return max((tm // _SUBLANE) * _SUBLANE, _SUBLANE)


def _vmem_budget_bytes():
    """~85% of per-TensorCore VMEM; conservative v7x (64 MiB) fallback."""
    cap = 64 * 1024 * 1024
    try:
        info = pltpu.get_tpu_info()
        cap = int(getattr(info, "vmem_capacity_bytes", cap) or cap)
    except Exception:
        pass
    return int(0.85 * cap)


def _fused_mlp_kernel(*refs, num_layers, compute_dtype):
    """refs = (x_ref, w0, b0, w1, b1, ..., w_{L-1}, b_{L-1}, o_ref).

    x_ref:  (TM, D0)          activation row tile (f32, cast to bf16 in-register)
    w_i:    (Di, D{i+1}')     pre-transposed bf16 weight (last layer col-padded)
    b_i:    (1, D{i+1}')      f32 bias (last layer col-padded with zeros)
    o_ref:  (TM, DL_pad)      output row tile
    """
    x_ref = refs[0]
    o_ref = refs[-1]
    wb = refs[1:-1]

    h = x_ref[...].astype(compute_dtype)          # bf16 MXU operand
    for i in range(num_layers):
        w = wb[2 * i][...]                         # bf16
        b = wb[2 * i + 1][...]                     # f32
        acc = jnp.dot(h, w, preferred_element_type=jnp.float32) + b
        if i < num_layers - 1:                     # ReLU on all but the last layer
            acc = jnp.maximum(acc, 0.0)
            h = acc.astype(compute_dtype)
        else:
            h = acc
    o_ref[...] = h.astype(o_ref.dtype)


def init_mlp_params(key, input_dim, hidden_dim, output_dim, num_layers):
    """Deterministic synthetic params matching nn.Linear shapes: W (out,in), b (out,)."""
    h = [hidden_dim] * (num_layers - 1)
    dims = list(zip([input_dim] + h, h + [output_dim]))
    params = []
    for (n_in, n_out) in dims:
        key, kw, kb = jax.random.split(key, 3)
        bound = 1.0 / jnp.sqrt(n_in)
        w = jax.random.uniform(kw, (n_out, n_in), jnp.float32, -bound, bound)
        b = jax.random.uniform(kb, (n_out,), jnp.float32, -bound, bound)
        params.append((w, b))
    return params


def mlp_forward(x, params, *, row_tile=512, compute_dtype=jnp.bfloat16):
    """Equivalent of MLP.forward: ReLU after every layer except the last."""
    num_layers = len(params)
    lead_shape = x.shape[:-1]
    in_dim = x.shape[-1]
    out_dim = params[-1][0].shape[0]

    x2d = x.reshape(-1, in_dim)
    n = x2d.shape[0]

    dims = [in_dim] + [w.shape[0] for (w, _) in params]   # in, h1, ..., out
    p_out = _round_up(dims[-1], _LANE)                     # lane-dense output stores

    # Pre-transpose once to (d_in, d_out) and cast to bf16 (one-time cost, amortized).
    # Only the last layer's columns are padded to 128: zero cols + zero bias keep the
    # math exact and are sliced away afterwards.  Hidden dims never touch HBM.
    wb = []
    for i, (w, b) in enumerate(params):
        d_in, d_out = dims[i], dims[i + 1]
        c_out = p_out if i == num_layers - 1 else d_out
        wt = jnp.zeros((d_in, c_out), compute_dtype).at[:, :d_out].set(
            w.T.astype(compute_dtype))
        bp = jnp.zeros((1, c_out), jnp.float32).at[:, :d_out].set(b[None, :])
        wb.append(wt)
        wb.append(bp)

    # --- VMEM footprint model: single-buffered weights/biases, double-buffered x/out
    # tiles, and ~2 live intermediate activations (f32 accumulator + bf16 copy). ---
    wb_bytes = sum(int(a.size) * a.dtype.itemsize for a in wb)
    max_feat = max(dims[:-1] + [p_out])
    x_item = x2d.dtype.itemsize

    def footprint(tm):
        return (wb_bytes
                + 2 * tm * in_dim * x_item            # x tile, double-buffered
                + 2 * tm * p_out * 4                  # out tile, double-buffered
                + 2 * tm * max_feat * 6)              # intermediate h (f32 + bf16)

    budget = _vmem_budget_bytes()

    # --- Row tile: multiple of 8, MXU-M aligned when large, capped so that (a) the
    # grid has >= 2 steps whenever there is enough work (v7x has 2 TensorCores under
    # "parallel" semantics) and (b) the footprint fits the VMEM budget. ---
    n8 = _round_up(max(n, 1), _SUBLANE)
    tm = min(_round_up(row_tile, _SUBLANE), n8)
    if n8 >= 2 * _SUBLANE:
        tm = min(tm, _round_up(-(-n // 2), _SUBLANE))
    tm = _align_tile(tm)
    while tm > _SUBLANE and footprint(tm) > budget:
        tm = _align_tile(tm // 2)
    # TODO(synk): if a single weight exceeds the VMEM budget (very large hidden dims),
    # add a grid axis / emit_pipeline over weight N/K tiles; not needed at these sizes.

    n_pad = _round_up(n, tm)
    if n_pad == n:
        x_in = x2d                                   # no host-side pad when not needed
    else:
        x_in = jnp.zeros((n_pad, in_dim), x2d.dtype).at[:n].set(x2d)

    grid = (n_pad // tm,)
    in_specs = [pl.BlockSpec((tm, in_dim), lambda i: (i, 0))]
    # Weights & biases: whole-array resident in VMEM, single copy (no double buffer).
    in_specs += [pl.BlockSpec(memory_space=pltpu.MemorySpace.VMEM) for _ in wb]
    out_specs = pl.BlockSpec((tm, p_out), lambda i: (i, 0))

    vmem_limit = int(min(budget, max(2 * footprint(tm), 32 * 1024 * 1024)))

    kernel = functools.partial(_fused_mlp_kernel, num_layers=num_layers,
                               compute_dtype=compute_dtype)
    out_padded = pl.pallas_call(
        kernel,
        out_shape=jax.ShapeDtypeStruct((n_pad, p_out), x.dtype),
        grid_spec=pltpu.PrefetchScalarGridSpec(
            num_scalar_prefetch=0,
            grid=grid,
            in_specs=in_specs,
            out_specs=out_specs,
        ),
        compiler_params=pltpu.CompilerParams(
            dimension_semantics=("parallel",),       # independent row tiles
            vmem_limit_bytes=vmem_limit,
        ),
    )(x_in, *wb)

    return out_padded[:n, :out_dim].reshape(*lead_shape, out_dim)


def _reference_mlp(x, params, compute_dtype=jnp.bfloat16):
    """Reference with the same numerics as the kernel: bf16 matmul, f32 accumulate."""
    h = x
    for i, (w, b) in enumerate(params):
        h = jnp.dot(h.astype(compute_dtype), w.T.astype(compute_dtype),
                    preferred_element_type=jnp.float32) + b
        if i < len(params) - 1:
            h = jnp.maximum(h, 0.0)
    return h


if __name__ == "__main__":
    key = jax.random.PRNGKey(0)
    k_x, k_p = jax.random.split(key)

    # Small shapes consistent with the module's usage (token features):
    batch, seq = 2, 8
    input_dim, hidden_dim, output_dim, num_layers = 32, 32, 16, 3

    x = jax.random.normal(k_x, (batch, seq, input_dim), jnp.float32)
    params = init_mlp_params(k_p, input_dim, hidden_dim, output_dim, num_layers)

    out = jax.block_until_ready(mlp_forward(x, params))

    ref = _reference_mlp(x, params)
    assert out.shape == (batch, seq, output_dim), out.shape
    assert jnp.allclose(out, ref, atol=1e-2, rtol=1e-2), "mismatch vs reference"

    print("KERNEL_OK")
</pallas_src>

<mosaic_0001>
module attributes {stable_mosaic.version = 11 : i64} {
  func.func @_fused_mlp_kernel(%arg0: i32, %arg1: memref<8x32xf32, #tpu.memory_space<vmem>>, %arg2: memref<32x32xbf16, #tpu.memory_space<vmem>>, %arg3: memref<1x32xf32, #tpu.memory_space<vmem>>, %arg4: memref<32x32xbf16, #tpu.memory_space<vmem>>, %arg5: memref<1x32xf32, #tpu.memory_space<vmem>>, %arg6: memref<32x128xbf16, #tpu.memory_space<vmem>>, %arg7: memref<1x128xf32, #tpu.memory_space<vmem>>, %arg8: memref<8x128xf32, #tpu.memory_space<vmem>>) attributes {dimension_semantics = [#tpu.dimension_semantics<parallel>], iteration_bounds = array<i64: 2>, scalar_prefetch = 0 : i64, scratch_operands = 0 : i64, tpu.core_type = #tpu.core_type<tc>, window_params = [{transform_indices = @transform_0, window_bounds = array<i64: 8, 32>}, {pipeline_mode = #tpu.pipeline_mode<synchronous>, transform_indices = @transform_1, window_bounds = array<i64: 32, 32>}, {pipeline_mode = #tpu.pipeline_mode<synchronous>, transform_indices = @transform_2, window_bounds = array<i64: 1, 32>}, {pipeline_mode = #tpu.pipeline_mode<synchronous>, transform_indices = @transform_3, window_bounds = array<i64: 32, 32>}, {pipeline_mode = #tpu.pipeline_mode<synchronous>, transform_indices = @transform_4, window_bounds = array<i64: 1, 32>}, {pipeline_mode = #tpu.pipeline_mode<synchronous>, transform_indices = @transform_5, window_bounds = array<i64: 32, 128>}, {pipeline_mode = #tpu.pipeline_mode<synchronous>, transform_indices = @transform_6, window_bounds = array<i64: 1, 128>}, {transform_indices = @transform_7, window_bounds = array<i64: 8, 128>}]} {
    %c0 = arith.constant 0 : index
    %c0_0 = arith.constant 0 : index
    %0 = vector.load %arg1[%c0, %c0_0] : memref<8x32xf32, #tpu.memory_space<vmem>>, vector<8x32xf32>
    %1 = arith.truncf %0 : vector<8x32xf32> to vector<8x32xbf16>
    %c0_1 = arith.constant 0 : index
    %c0_2 = arith.constant 0 : index
    %2 = vector.load %arg2[%c0_1, %c0_2] : memref<32x32xbf16, #tpu.memory_space<vmem>>, vector<32x32xbf16>
    %c0_3 = arith.constant 0 : index
    %c0_4 = arith.constant 0 : index
    %3 = vector.load %arg3[%c0_3, %c0_4] : memref<1x32xf32, #tpu.memory_space<vmem>>, vector<1x32xf32>
    %cst = arith.constant dense<0.000000e+00> : vector<8x32xf32>
    %4 = tpu.matmul %1, %2, %cst {dimension_numbers = #tpu.dot_dimension_numbers<[1], [0], [0], [1], [0, 0, 1, 1], [], []>} : vector<8x32xbf16>, vector<32x32xbf16>, vector<8x32xf32> -> vector<8x32xf32>
    %5 = vector.broadcast %3 : vector<1x32xf32> to vector<8x32xf32>
    %6 = arith.addf %4, %5 : vector<8x32xf32>
    %cst_5 = arith.constant 0.000000e+00 : f32
    %7 = vector.broadcast %cst_5 : f32 to vector<8x32xf32>
    %8 = arith.maximumf %6, %7 : vector<8x32xf32>
    %9 = arith.truncf %8 : vector<8x32xf32> to vector<8x32xbf16>
    %c0_6 = arith.constant 0 : index
    %c0_7 = arith.constant 0 : index
    %10 = vector.load %arg4[%c0_6, %c0_7] : memref<32x32xbf16, #tpu.memory_space<vmem>>, vector<32x32xbf16>
    %c0_8 = arith.constant 0 : index
    %c0_9 = arith.constant 0 : index
    %11 = vector.load %arg5[%c0_8, %c0_9] : memref<1x32xf32, #tpu.memory_space<vmem>>, vector<1x32xf32>
    %cst_10 = arith.constant dense<0.000000e+00> : vector<8x32xf32>
    %12 = tpu.matmul %9, %10, %cst_10 {dimension_numbers = #tpu.dot_dimension_numbers<[1], [0], [0], [1], [0, 0, 1, 1], [], []>} : vector<8x32xbf16>, vector<32x32xbf16>, vector<8x32xf32> -> vector<8x32xf32>
    %13 = vector.broadcast %11 : vector<1x32xf32> to vector<8x32xf32>
    %14 = arith.addf %12, %13 : vector<8x32xf32>
    %cst_11 = arith.constant 0.000000e+00 : f32
    %15 = vector.broadcast %cst_11 : f32 to vector<8x32xf32>
    %16 = arith.maximumf %14, %15 : vector<8x32xf32>
    %17 = arith.truncf %16 : vector<8x32xf32> to vector<8x32xbf16>
    %c0_12 = arith.constant 0 : index
    %c0_13 = arith.constant 0 : index
    %18 = vector.load %arg6[%c0_12, %c0_13] : memref<32x128xbf16, #tpu.memory_space<vmem>>, vector<32x128xbf16>
    %c0_14 = arith.constant 0 : index
    %c0_15 = arith.constant 0 : index
    %19 = vector.load %arg7[%c0_14, %c0_15] : memref<1x128xf32, #tpu.memory_space<vmem>>, vector<1x128xf32>
    %cst_16 = arith.constant dense<0.000000e+00> : vector<8x128xf32>
    %20 = tpu.matmul %17, %18, %cst_16 {dimension_numbers = #tpu.dot_dimension_numbers<[1], [0], [0], [1], [0, 0, 1, 1], [], []>} : vector<8x32xbf16>, vector<32x128xbf16>, vector<8x128xf32> -> vector<8x128xf32>
    %21 = vector.broadcast %19 : vector<1x128xf32> to vector<8x128xf32>
    %22 = arith.addf %20, %21 : vector<8x128xf32>
    %c0_17 = arith.constant 0 : index
    %c0_18 = arith.constant 0 : index
    %23 = vector.load %arg8[%c0_17, %c0_18] : memref<8x128xf32, #tpu.memory_space<vmem>>, vector<8x128xf32>
    tpu.vector_store %arg8[%c0_17, %c0_18], %22 {strides = array<i32>} : memref<8x128xf32, #tpu.memory_space<vmem>>, vector<8x128xf32>,
    return
  }
  func.func @transform_0(%arg0: i32) -> (i32, i32) {
    %c0_i32 = arith.constant 0 : i32
    %c0_i32_0 = arith.constant 0 : i32
    return %arg0, %c0_i32 : i32, i32
  }
  func.func @transform_1(%arg0: i32) -> (i32, i32) {
    %c0_i32 = arith.constant 0 : i32
    %c0_i32_0 = arith.constant 0 : i32
    %c0_i32_1 = arith.constant 0 : i32
    return %c0_i32, %c0_i32_0 : i32, i32
  }
  func.func @transform_2(%arg0: i32) -> (i32, i32) {
    %c0_i32 = arith.constant 0 : i32
    %c0_i32_0 = arith.constant 0 : i32
    %c0_i32_1 = arith.constant 0 : i32
    return %c0_i32, %c0_i32_0 : i32, i32
  }
  func.func @transform_3(%arg0: i32) -> (i32, i32) {
    %c0_i32 = arith.constant 0 : i32
    %c0_i32_0 = arith.constant 0 : i32
    %c0_i32_1 = arith.constant 0 : i32
    return %c0_i32, %c0_i32_0 : i32, i32
  }
  func.func @transform_4(%arg0: i32) -> (i32, i32) {
    %c0_i32 = arith.constant 0 : i32
    %c0_i32_0 = arith.constant 0 : i32
    %c0_i32_1 = arith.constant 0 : i32
    return %c0_i32, %c0_i32_0 : i32, i32
  }
  func.func @transform_5(%arg0: i32) -> (i32, i32) {
    %c0_i32 = arith.constant 0 : i32
    %c0_i32_0 = arith.constant 0 : i32
    %c0_i32_1 = arith.constant 0 : i32
    return %c0_i32, %c0_i32_0 : i32, i32
  }
  func.func @transform_6(%arg0: i32) -> (i32, i32) {
    %c0_i32 = arith.constant 0 : i32
    %c0_i32_0 = arith.constant 0 : i32
    %c0_i32_1 = arith.constant 0 : i32
    return %c0_i32, %c0_i32_0 : i32, i32
  }
  func.func @transform_7(%arg0: i32) -> (i32, i32) {
    %c0_i32 = arith.constant 0 : i32
    %c0_i32_0 = arith.constant 0 : i32
    return %arg0, %c0_i32 : i32, i32
  }
}

</mosaic_0001>

<bundles_post_ra>
// kernel: tpu_custom_call.1
= control target key start
LH: loop header
LB: loop body
LE: loop exit
PB: predicated region body
PF: predicated region fallthrough
CT: control target
= control target key end

     0   :  { %s1124_s0 = inlined_call_operand.hbm [shape: f32[16,32], index: 0, kind: input, shape index: {}]   ;;  %s1125_s1 = inlined_call_operand.hbm [shape: bf16[32,32], index: 1, kind: input, shape index: {}]   ;;  %s1126_s2 = inlined_call_operand.vmem [shape: f32[1,32], index: 2, kind: input, shape index: {}]   ;;  %s1127_s3 = inlined_call_operand.hbm [shape: bf16[32,32], index: 3, kind: input, shape index: {}]   ;;  %s1128_s4 = inlined_call_operand.vmem [shape: f32[1,32], index: 4, kind: input, shape index: {}]   ;;  %s1129_s5 = inlined_call_operand.hbm [shape: bf16[32,128], index: 5, kind: input, shape index: {}]   ;;  %s1130_s6 = inlined_call_operand.vmem [shape: f32[1,128], index: 6, kind: input, shape index: {}]   ;;  %s1131_s7 = inlined_call_operand.hbm [shape: f32[16,128], index: 7, kind: output, shape index: {}]  }
   0x1   :  { %1132 = sst [smem:[#allocation15_spill]] %s1125_s1 }
   0x2   :  { %12 = vsyncpa [#allocation3], 0 }
   0x3   :  { %14 = vsyncpa [#allocation3 + $0x1], 0 }
   0x4   :  { %15 = vsyncpa [#allocation6], 0 }
   0x5   :  { %16 = vsyncpa [#allocation9], 0 }
   0x6   :  { %17 = vsyncpa [#allocation4], 0 }
   0x7   :  { %19 = vsyncpa [#allocation4 + $0x1], 0  ;;  %s952_s24 = smov 0   ;;  %s954_s25 = smov 0  }
   0x8   :  { %s956_s26 = smov 0   ;;  %s958_s27 = smov 0  }
   0x9 LB: > { %s1133_s1 = sld [smem:[#allocation15_spill]]  ;;  %s976_s8 = sadd.s32 4294967295, %s905_s27   ;;  %s905_s27 = sphi %s958_s27, %s1144_s27   ;;  %s901_s26 = sphi %s956_s26, %s1143_s26   ;;  %s897_s25 = sphi %s954_s25, %s1142_s25   ;;  %s893_s24 = sphi %s952_s24, %s1141_s24  }
   0xa   : > { %p579_p0 = scmp.ge.s32.totalorder %s905_s27, 1  ;;  %p46_p1 = scmp.eq.s32.totalorder %s976_s8, 0 }
   0xb   : > { %p208_p2 = scmp.lt.s32.totalorder %s905_s27, 3  ;;  %s907_s10 = smov [#allocation5]  }
   0xc   : > { %s221_s11 = sshll.u32 %s907_s10, 4  ;;  %s236_s14 = sshll.u32 %s1127_s3, 4  ;;  %s222_s11 = int_to_ptr.vmem [resolvable:$true] %s221_s11  ;;  %s237_s14 = int_to_ptr.hbm [resolvable:$true] %s236_s14 }
   0xd   : > { %p981_p3 = pnand %p579_p0, %p208_p2  ;;  %s253_s18 = sshll.u32 %s1129_s5, 4  ;;  %s254_s18 = int_to_ptr.hbm [resolvable:$true] %s253_s18 }
   0xe   : > { %s908_s19 = smov [#allocation7]   ;;  %s909_s21 = smov 64  }
   0xf   : > { %s219_s30 = sshll.u32 %s1133_s1, 4  ;;  %p645_p4 = pneg %p981_p3  ;;  %s220_s30 = int_to_ptr.hbm [resolvable:$true] %s219_s30 }
  0x10   : > { %s238_s20 = sshll.u32 %s908_s19, 4  ;;  %s910_s22 = smov 4   ;;  %s239_s20 = int_to_ptr.vmem [resolvable:$true] %s238_s20 }
  0x11   : > { %p993_p6 = pnand %p645_p4, %p46_p1  ;;  %s911_s23 = smov [#allocation8]  }
  0x12   : > { %s255_s28 = sshll.u32 %s911_s23, 4  ;;  %s578_s29 = sadd.s32 4294967294, %s905_s27   ;;  %s256_s28 = int_to_ptr.vmem [resolvable:$true] %s255_s28 }
  0x13   : > { %648 = dma.hbm_to_vmem [thread:$0]  (!%p993_p6), %s220_s30, 256, %s222_s11, [#allocation6], %s909_s21, %s909_s21, %s910_s22  }
  0x14   : > { %651 = dma.hbm_to_vmem [thread:$0]  (!%p993_p6), %s237_s14, 256, %s239_s20, [#allocation6], %s909_s21, %s909_s21, %s910_s22  }
  0x15   : > { %654 = dma.hbm_to_vmem [thread:$0]  (!%p993_p6), %s254_s18, 256, %s256_s28, [#allocation9], %s909_s21, %s909_s21, %s910_s22  }
  0x16   : > { %s1008_s10 = sadd.s32 1, %s905_s27   ;;  %s32_s12 = sadd.s32 1, %s901_s26 }
  0x17   : > { %s29_s30 = ssub.s32 %s905_s27, %s1008_s10  ;;  %p39_p7 = scmp.ne.s32.totalorder %s901_s26, %s897_s25 }
  0x18   : > { %p30_p8 = scmp.eq.s32.totalorder %s29_s30, 0  ;;  %p40_p9 = scmp.eq.s32.totalorder %s905_s27, 0 }
  0x19   : > { %p45_p10 = scmp.ne.s32.totalorder %s897_s25, %s893_s24  ;;  %p195_p11 = scmp.eq.s32.totalorder %s976_s8, 1 }
  0x1a   : > { %s1020_s11 = scalar_select %p30_p8, %s901_s26, %s32_s12  }
  0x1b   : > { %p1024_p12 = por %p46_p1, %p45_p10  ;;  %p1028_p13 = por %p195_p11, %p39_p7 }
  0x1c   : > { %p201_p0 = scmp.eq.s32.totalorder %s578_s29, 1  ;;  %p41_p2 = por %p40_p9, %p39_p7 }
  0x1d   : > { %s272_s15 = sand.u32 1, %s901_s26   ;;  %p666_p6 = scmp.lt.s32.totalorder %s905_s27, 2 }
  0x1e   : > { %p1033_p4 = por %p201_p0, %p45_p10  ;;  %s584_s17 = sshll.u32 %s272_s15, 3 }
  0x1f   : > { %s585_s18 = sshll.u32 %s905_s27, 3  ;;  %s276_s23 = scalar_lea.vmem [#allocation2], %s584_s17 }
  0x20   : > { %s280_s21 = scalar_lea.hbm %s1124_s0, %s585_s18  ;;  %s284_s28 = sshll.u32 %s276_s23, 4  ;;  %s285_s28 = int_to_ptr.vmem [resolvable:$true] %s284_s28 }
  0x21   : > { %s282_s22 = sshll.u32 %s280_s21, 4  ;;  %p1042_p8 = pnand %p666_p6, %p41_p2  ;;  %s283_s22 = int_to_ptr.hbm [resolvable:$true] %s282_s22 }
  0x22   : > { %s273_s12 = scalar_lea.sflag [#allocation3], %s272_s15  ;;  %s801_s30 = sshra.s32 %s283_s22, 4  ;;  %s802_s30 = int_to_ptr.hbm [resolvable:$true] %s801_s30 }
  0x23   : > { %s803_s1 = scalar_lea.hbm %s802_s30, 8  ;;  %p805_p9 = pneg %p1042_p8 }
  0x24   : > { %p804_p7 = scmp.ne.s32.totalorder %s802_s30, %s803_s1  ;;  %s808_s17 = scalar_lea.hbm %s1124_s0, 16 }
  0x25   : > { %p809_p0 = scmp.lt.s32.totalorder %s802_s30, %s1124_s0  ;;  %p810_p2 = scmp.lt.s32.totalorder %s808_s17, %s803_s1 }
  0x26   : > { %p806_p10 = pnand %p805_p9, %p804_p7 }
  0x27   : > { %p811_p6 = por %p810_p2, %p809_p0 }
  0x28   : > { %p807_p11 = pneg %p806_p10 }
  0x2a   : > { %p812_p5 = pnand %p811_p6, %p807_p11 }
  0x2c   : > { %815 = shalt.err (!%p812_p5)
}
  0x2d   : > { %658 = dma.hbm_to_vmem [thread:$0]  (!%p1042_p8), %s283_s22, 128, %s285_s28, %s273_s12  }
  0x2e   : > { %293 = sbr.rel (%p981_p3) target bundleno = 468 (0x1d4), region = 48  ;;  %s1059_s15 = sand.u32 (!%p981_p3), 1, %s897_s25  }
  0x2f   : > { %s587_s23 = sshll.u32 (!%p981_p3), %s1059_s15, 3  ;;  %s296_s18 = scalar_lea.sflag (!%p981_p3), [#allocation3], %s1059_s15 }
  0x30   : > { %s299_s1 = scalar_lea.vmem (!%p981_p3), [#allocation2], %s587_s23 }
  0x33   : > { %876 = dma.done.wait (%p1024_p12), %s296_s18, 128  }
  0x34   : > { %878 = vsyncadd (%p1024_p12), %s296_s18, 4294967168 }
  0x35   : > { %880 = dma.done.wait (%p46_p1), [#allocation6], 512  }
  0x36   : > { %882 = vsyncadd (%p46_p1), [#allocation6], 4294966784 }
  0x37   : > { %884 = dma.done.wait (%p46_p1), [#allocation9], 256  }
  0x38   : > { %886 = vsyncadd (%p46_p1), [#allocation9], 4294967040  ;;  %v624_v0 = vld [vmem:[#allocation5 + $0x8] sm:$0xff]  ;;  %v623_v1 = vld [vmem:[#allocation5] sm:$0xff]  ;;  %vm369_vm0 = vcmask 261120   ;;  %s620_s29 = sshll.u32 %s976_s8, 3 }
  0x39   : > { %379 = vmatpush.bf16.msra.mxu0 %v624_v0  ;;  %v347_v2 = vld [vmem:[%s299_s1] sm:$0xff]  ;;  %v628_v12 = vld [vmem:[#allocation8 + $0x8] sm:$0xff]  ;;  %v627_v13 = vld [vmem:[#allocation8] sm:$0xff]  ;;  %s474_s19 = scalar_lea.hbm %s1131_s7, %s620_s29  ;;  %s345_s21 = scalar_lea.vmem [#allocation10], %s587_s23 }
  0x3a   : > { %v348_v3 = vpack.c.bf16 %v347_v2, %v347_v2  ;;  %v626_v4 = vld [vmem:[#allocation7 + $0x8] sm:$0xff]  ;;  %v625_v5 = vld [vmem:[#allocation7] sm:$0xff]  ;;  %455 = vmatpush.bf16.msra.mxu2 %v628_v12  ;;  %s476_s18 = sshll.u32 %s345_s21, 4  ;;  %s478_s1 = sshll.u32 %s474_s19, 4  ;;  %s477_s18 = int_to_ptr.vmem [resolvable:$true] %s476_s18  ;;  %s479_s1 = int_to_ptr.hbm [resolvable:$true] %s478_s1 }
  0x3b   : > { %417 = vmatpush.bf16.msra.mxu1 %v626_v4  ;;  %v708_v6 = vld [vmem:[%s1126_s2] ss:$0 sm:$0xff]  ;;  %s464_s9 = scalar_lea.sflag [#allocation4], %s1059_s15  ;;  %s845_s8 = sshra.s32 %s479_s1, 4  ;;  %s846_s8 = int_to_ptr.hbm [resolvable:$true] %s845_s8 }
  0x3c   : > { %v709_v14 = vld [vmem:[%s1128_s4] ss:$0 sm:$0xff]  ;;  %s847_s13 = scalar_lea.hbm %s846_s8, 8  ;;  %s851_s29 = scalar_lea.hbm %s1131_s7, 16 }
  0x3d   : > { %380 = vmatpush.bf16.msra.mxu0 %v623_v1  ;;  %v710_v20 = vld [vmem:[%s1130_s6] ss:$0 sm:$0xff]  ;;  %p848_p1 = scmp.ne.s32.totalorder %s846_s8, %s847_s13  ;;  %p852_p12 = scmp.lt.s32.totalorder %s846_s8, %s1131_s7 }
  0x3e   : > { %456 = vmatpush.bf16.msra.mxu2 %v627_v13  ;;  %p853_p8 = scmp.lt.s32.totalorder %s851_s29, %s847_s13 }
  0x3f   : > { %418 = vmatpush.bf16.msra.mxu1 %v625_v5  ;;  %p849_p3 = pnand %p848_p1, %p1028_p13 }
  0x40   : > { %600 = vmatmul.msk.bf16.vlgmr.msra.gmra.mxu0 %vm369_vm0, %v348_v3  ;;  %p854_p7 = por %p853_p8, %p852_p12 }
  0x41   : > { %p850_p5 = pneg %p849_p3 }
  0x43   : > { %p855_p9 = pnand %p854_p7, %p850_p5 }
  0xbd   : > { %v382_v7 = vpop.f32.mrf.mxu0 }
  0xbe   : > { %v383_v8 = vadd.f32 %v708_v6, %v382_v7 }
  0xc0   : > { %v386_v9 = vmax.f32 %v383_v8, 0.0 }
  0xc2   : > { %v387_v10 = vpack.c.bf16 %v386_v9, %v386_v9 }
  0xc4   : > { %609 = vmatmul.msk.bf16.vlgmr.msra.gmra.mxu1 %vm369_vm0, %v387_v10 }
  0xc5   : > { %v384_v11 = vpop.f32.mrf.mxu0 }
 0x141   : > { %v420_v15 = vpop.f32.mrf.mxu1 }
 0x142   : > { %v421_v16 = vadd.f32 %v709_v14, %v420_v15 }
 0x144   : > { %v424_v17 = vmax.f32 %v421_v16, 0.0 }
 0x146   : > { %v425_v18 = vpack.c.bf16 %v424_v17, %v424_v17 }
 0x148   : > { %618 = vmatmul.msk.bf16.vlgmr.msra.gmra.mxu2 %vm369_vm0, %v425_v18 }
 0x149   : > { %v422_v19 = vpop.f32.mrf.mxu1 }
 0x1cb   : > { %v458_v21 = vpop.f32.mrf.mxu2 }
 0x1cc   : > { %v459_v22 = vadd.f32 %v710_v20, %v458_v21 }
 0x1ce   : > { %462 = vst [vmem:[%s345_s21] sm:$0xff] %v459_v22 }
 0x1cf   : > { %858 = shalt.err (!%p855_p9)
}
 0x1d0   : > { %643 = dma.vmem_to_hbm [thread:$0]  (%p1028_p13), %s477_s18, 128, %s479_s1, %s464_s9  }
 0x1d3   : > { %v460_v23 = vpop.f32.mrf.mxu2 }
 0x1d4 PF: > { %s490_s15 = sand.u32 1, %s893_s24   ;;  %p1140_p10 = scmp.ge.s32.totalorder %s905_s27, 2 }
 0x1d5   : > { %s491_s30 = scalar_lea.sflag [#allocation4], %s490_s15 }
 0x1d6   : > { %p660_p11 = pnand %p1140_p10, %p1033_p4 }
 0x1d8   : > { %p661_p0 = pneg %p660_p11 }
 0x1da   : > { %888 = dma.done.wait (%p661_p0), %s491_s30, 128  }
 0x1db   : > { %890 = vsyncadd (%p661_p0), %s491_s30, 4294967168  ;;  %p22_p2 = scmp.ge.s32.totalorder %s1008_s10, 4   ;;  %s1141_s24 = smov %s897_s25 }
 0x1dc   : > { %s1142_s25 = smov %s901_s26  ;;  %s1143_s26 = smov %s1020_s11 }
 0x1dd   : > { %s1144_s27 = smov %s1008_s10  ;;  %24 = sbr.rel (!%p22_p2) target bundleno = 9 (0x9), region = 105 }
 0x1e2   :  { %497 = vsyncpa [#allocation3], 1 }
 0x1e3   :  { %499 = vsyncpa [#allocation3 + $0x1], 1 }
 0x1e4   :  { %500 = vsyncpa [#allocation6], 1 }
 0x1e5   :  { %501 = vsyncpa [#allocation9], 1 }
 0x1e6   :  { %502 = vsyncpa [#allocation4], 1 }
 0x1e7   :  { %504 = vsyncpa [#allocation4 + $0x1], 1 }

</bundles_post_ra>
